<compile_context>
chip_gen: v6e
topology: v6e:2x2x1
jax: 0.10.0
libtpu: 0.0.40
codegen_flags: <defaults>
</compile_context>

<pallas_src>
import jax
import jax.numpy as jnp
from jax import lax
from jax.experimental import pallas as pl
from jax.experimental.pallas import tpu as pltpu

BN_EPS = 1e-5
NORM_EPS = 1e-12


def _round_up(n, m):
    return ((n + m - 1) // m) * m


def _cdiv(a, b):
    return -(-a // b)


def _pad2(a, rows, cols):
    return jnp.pad(a, ((0, rows - a.shape[0]), (0, cols - a.shape[1])))


def _even_tiles(total, max_tile, align):
    """Split `total` (a multiple of `align`) into near-even aligned tiles."""
    n = max(1, _cdiv(total, max_tile))
    tile = _round_up(_cdiv(total, n), align)
    return tile, n, tile * n


def _vmem_limit_bytes():
    try:
        cap = pltpu.get_tpu_info().vmem_capacity_bytes
    except Exception:
        cap = 128 * 1024 * 1024
    # Leave headroom for Mosaic internal scratch; never request the full
    # physical VMEM (v7x: 64 MiB -> 48 MiB; v5e/v6e: 128 MiB -> 100 MiB).
    return max(32 * 1024 * 1024,
               min(cap - 16 * 1024 * 1024, 100 * 1024 * 1024))


# ---------- phase 1: projector matmul + sublane-partial BN statistics -------
def _proj_stats_kernel(x_ref, w1_ref, h_ref, hsum_ref, hsq_ref):
    # bf16 operands, f32 accumulation on the MXU.
    h32 = jnp.dot(x_ref[...], w1_ref[...], preferred_element_type=jnp.float32)
    hb = h32.astype(h_ref.dtype)
    h_ref[...] = hb
    # Stats are taken from the bf16-rounded h that phase 2 will normalize.
    h = hb.astype(jnp.float32)
    # Sublane-partial stats: group rows 8-at-a-time and add vregs pointwise
    # (pure VALU adds).  The 8->1 cross-sublane reduce and the cross-tile
    # reduce are deferred to the tiny JAX epilogue, so no XLU work competes
    # with MXU pushes in this matmul-bound phase.  Padded batch rows are zero
    # and contribute nothing.
    hg = h.reshape(h.shape[0] // 8, 8, h.shape[1])
    hsum_ref[0] = jnp.sum(hg, axis=0)
    hsq_ref[0] = jnp.sum(hg * hg, axis=0)


# ---------- phase 2: folded BN + ReLU + Linear + normalize + cosine head ----
def _bn_head_kernel(h_ref, ss_ref, w2_ref, b2_ref, wnt_ref, out_ref, yn_ref):
    # yn is computed once per batch tile (class-tile index j == 0) into a VMEM
    # scratch and reused for every class tile -> head VMEM independent of C.
    @pl.when(pl.program_id(1) == 0)
    def _():
        h = h_ref[...].astype(jnp.float32)
        h = h * ss_ref[0:1, :] + ss_ref[1:2, :]      # BatchNorm folded to 1 FMA
        h = jnp.maximum(h, 0.0)                      # ReLU
        y = jnp.dot(h.astype(jnp.bfloat16), w2_ref[...],
                    preferred_element_type=jnp.float32) + b2_ref[...]
        # F.normalize(y): y / max(||y||, eps) == y * rsqrt(max(||y||^2, eps^2))
        sumsq = jnp.sum(y * y, axis=-1, keepdims=True)
        yn = y * lax.rsqrt(jnp.maximum(sumsq, NORM_EPS * NORM_EPS))
        yn_ref[...] = yn.astype(yn_ref.dtype)

    # wnt is the pre-normalized classifier weight, stored (E, C), tiled over C.
    out_ref[...] = jnp.dot(
        yn_ref[...], wnt_ref[...],
        preferred_element_type=jnp.float32).astype(out_ref.dtype)


def sphere_mlp_forward(x, w1, gamma, beta, w2, b2, wcls, *,
                       batch_tile=256, class_tile=1024,
                       out_dtype=jnp.float32):
    B, E = x.shape
    H = w1.shape[1]
    C = wcls.shape[0]
    f32, bf16 = jnp.float32, jnp.bfloat16

    # Lane dims padded to 128 (lane-dense loads/stores, full MXU tiles).
    Ep, Hp = _round_up(E, 128), _round_up(H, 128)
    tb, n_btiles, Bp = _even_tiles(_round_up(B, 8), batch_tile, 8)
    tc, n_ctiles, Cp = _even_tiles(_round_up(C, 128), class_tile, 128)

    xp = _pad2(x.astype(f32), Bp, Ep).astype(bf16)
    w1p = _pad2(w1.astype(f32), Ep, Hp).astype(bf16)
    w2p = _pad2(w2.astype(f32), Hp, Ep).astype(bf16)
    b2p = _pad2(b2.reshape(1, -1).astype(f32), 1, Ep)
    # gamma/beta padded with zeros -> padded H columns stay exactly zero.
    gp = jnp.pad(gamma.astype(f32), (0, Hp - H))
    bp = jnp.pad(beta.astype(f32), (0, Hp - H))

    # F.normalize(weight) done once, stored transposed (E, C), zero-padded.
    w = wcls.astype(f32)
    wn = w * lax.rsqrt(jnp.maximum(jnp.sum(w * w, axis=-1, keepdims=True),
                                   NORM_EPS * NORM_EPS))
    wnt = _pad2(wn.T, Ep, Cp).astype(bf16)

    vmem_limit = _vmem_limit_bytes()

    # ---- phase 1: h = x @ W1 + per-tile sublane-partial BN stats -----------
    h, hsum_p, hsq_p = pl.pallas_call(
        _proj_stats_kernel,
        out_shape=(jax.ShapeDtypeStruct((Bp, Hp), bf16),
                   jax.ShapeDtypeStruct((n_btiles, 8, Hp), f32),
                   jax.ShapeDtypeStruct((n_btiles, 8, Hp), f32)),
        grid=(n_btiles,),
        in_specs=[
            pl.BlockSpec((tb, Ep), lambda i: (i, 0)),
            pl.BlockSpec((Ep, Hp), lambda i: (0, 0),         # W1 resident,
                         pipeline_mode=pl.Buffered(1)),       # single-buffered
        ],
        out_specs=(pl.BlockSpec((tb, Hp), lambda i: (i, 0)),
                   pl.BlockSpec((1, 8, Hp), lambda i: (i, 0, 0)),
                   pl.BlockSpec((1, 8, Hp), lambda i: (i, 0, 0))),
        compiler_params=pltpu.CompilerParams(
            dimension_semantics=("parallel",),
            vmem_limit_bytes=vmem_limit),
        cost_estimate=pl.CostEstimate(
            flops=int(2 * Bp * Ep * Hp + 3 * Bp * Hp),
            transcendentals=0,
            bytes_accessed=int(2 * Bp * Ep + 2 * Ep * Hp + 2 * Bp * Hp
                               + 8 * n_btiles * 8 * Hp)),
    )(xp, w1p)

    # BatchNorm training-mode stats (biased variance) folded into scale/shift.
    # Tiny (Hp,) math; done in plain JAX between the two gridded kernels.
    hsum = jnp.sum(hsum_p, axis=(0, 1))
    hsq = jnp.sum(hsq_p, axis=(0, 1))
    mean = hsum / B
    var = jnp.maximum(hsq / B - mean * mean, 0.0)
    scale = gp * lax.rsqrt(var + BN_EPS)
    shift = bp - mean * scale
    ss = jnp.stack([scale, shift], axis=0)           # (2, Hp) merged operand

    # ---- phase 2: BN + ReLU + Linear(H->E) + normalize + cosine classifier --
    out_itemsize = jnp.dtype(out_dtype).itemsize
    out = pl.pallas_call(
        _bn_head_kernel,
        out_shape=jax.ShapeDtypeStruct((Bp, Cp), out_dtype),
        grid=(n_btiles, n_ctiles),
        in_specs=[
            pl.BlockSpec((tb, Hp), lambda i, j: (i, 0)),
            pl.BlockSpec((2, Hp), lambda i, j: (0, 0),
                         pipeline_mode=pl.Buffered(1)),
            pl.BlockSpec((Hp, Ep), lambda i, j: (0, 0),       # W2 resident
                         pipeline_mode=pl.Buffered(1)),
            pl.BlockSpec((1, Ep), lambda i, j: (0, 0),
                         pipeline_mode=pl.Buffered(1)),
            pl.BlockSpec((Ep, tc), lambda i, j: (0, j)),      # Wn tiled over C
        ],
        out_specs=pl.BlockSpec((tb, tc), lambda i, j: (i, j)),
        scratch_shapes=[pltpu.VMEM((tb, Ep), bf16)],          # yn per batch tile
        compiler_params=pltpu.CompilerParams(
            dimension_semantics=("parallel", "arbitrary"),
            vmem_limit_bytes=vmem_limit),
        cost_estimate=pl.CostEstimate(
            flops=int(2 * Bp * Hp * Ep + 2 * Bp * Ep * Cp),
            transcendentals=int(Bp),
            bytes_accessed=int(2 * Bp * Hp + 8 * Hp + 2 * Hp * Ep + 4 * Ep
                               + 2 * Ep * Cp * n_btiles
                               + out_itemsize * Bp * Cp)),
    )(h, ss, w2p, b2p, wnt)

    return out[:B, :C]


def reference_forward(x, w1, gamma, beta, w2, b2, wcls):
    h = x @ w1
    mean = h.mean(0, keepdims=True)
    var = ((h - mean) ** 2).mean(0, keepdims=True)
    h = (h - mean) / jnp.sqrt(var + BN_EPS) * gamma + beta
    h = jnp.maximum(h, 0.0)
    y = h @ w2 + b2
    yn = y / jnp.maximum(jnp.linalg.norm(y, axis=-1, keepdims=True), NORM_EPS)
    wn = wcls / jnp.maximum(jnp.linalg.norm(wcls, axis=-1, keepdims=True),
                            NORM_EPS)
    return yn @ wn.T


if __name__ == "__main__":
    B, E, H, C = 8, 32, 64, 16   # batch, embedding_size, hidden_size, classes

    key = jax.random.PRNGKey(0)
    kx, kw, k1, k2, kb = jax.random.split(key, 5)

    x = jax.random.normal(kx, (B, E), dtype=jnp.float32)

    # self.weight: xavier_uniform_ on shape (num_classes, embedding_size)
    bound_cls = (6.0 / (E + C)) ** 0.5
    wcls = jax.random.uniform(kw, (C, E), jnp.float32, -bound_cls, bound_cls)

    # Linear(E, H, bias=False): PyTorch weight (H, E) -> stored transposed (E, H)
    bound1 = (1.0 / E) ** 0.5
    w1 = jax.random.uniform(k1, (E, H), jnp.float32, -bound1, bound1)

    # BatchNorm1d(H) affine params (default init)
    gamma = jnp.ones((H,), jnp.float32)
    beta = jnp.zeros((H,), jnp.float32)

    # Linear(H, E): PyTorch weight (E, H) -> stored transposed (H, E), bias (E,)
    bound2 = (1.0 / H) ** 0.5
    w2 = jax.random.uniform(k2, (H, E), jnp.float32, -bound2, bound2)
    b2 = jax.random.uniform(kb, (E,), jnp.float32, -bound2, bound2)

    out = jax.block_until_ready(
        sphere_mlp_forward(x, w1, gamma, beta, w2, b2, wcls))
    ref = reference_forward(x, w1, gamma, beta, w2, b2, wcls)

    assert out.shape == (B, C)
    # bf16 MXU operands (f32 accumulation); cosine-similarity outputs in [-1,1]
    assert jnp.allclose(out, ref, atol=5e-2, rtol=5e-2), \
        float(jnp.max(jnp.abs(out - ref)))

    print("KERNEL_OK")
</pallas_src>

<mosaic_0001>
module attributes {stable_mosaic.version = 11 : i64} {
  func.func @_proj_stats_kernel(%arg0: i32, %arg1: memref<8x128xbf16, #tpu.memory_space<vmem>>, %arg2: memref<128x128xbf16, #tpu.memory_space<vmem>>, %arg3: memref<8x128xbf16, #tpu.memory_space<vmem>>, %arg4: memref<1x8x128xf32, #tpu.memory_space<vmem>>, %arg5: memref<1x8x128xf32, #tpu.memory_space<vmem>>) attributes {dimension_semantics = [#tpu.dimension_semantics<parallel>], iteration_bounds = array<i64: 1>, scalar_prefetch = 0 : i64, scratch_operands = 0 : i64, tpu.core_type = #tpu.core_type<tc>, window_params = [{transform_indices = @transform_0, window_bounds = array<i64: 8, 128>}, {pipeline_mode = #tpu.pipeline_mode<synchronous>, transform_indices = @transform_1, window_bounds = array<i64: 128, 128>}, {transform_indices = @transform_2, window_bounds = array<i64: 8, 128>}, {transform_indices = @transform_3, window_bounds = array<i64: 1, 8, 128>}, {transform_indices = @transform_4, window_bounds = array<i64: 1, 8, 128>}]} {
    %c0 = arith.constant 0 : index
    %c0_0 = arith.constant 0 : index
    %0 = vector.load %arg1[%c0, %c0_0] : memref<8x128xbf16, #tpu.memory_space<vmem>>, vector<8x128xbf16>
    %c0_1 = arith.constant 0 : index
    %c0_2 = arith.constant 0 : index
    %1 = vector.load %arg2[%c0_1, %c0_2] : memref<128x128xbf16, #tpu.memory_space<vmem>>, vector<128x128xbf16>
    %cst = arith.constant dense<0.000000e+00> : vector<8x128xf32>
    %2 = tpu.matmul %0, %1, %cst {dimension_numbers = #tpu.dot_dimension_numbers<[1], [0], [0], [1], [0, 0, 1, 1], [], []>} : vector<8x128xbf16>, vector<128x128xbf16>, vector<8x128xf32> -> vector<8x128xf32>
    %3 = arith.truncf %2 : vector<8x128xf32> to vector<8x128xbf16>
    %c0_3 = arith.constant 0 : index
    %c0_4 = arith.constant 0 : index
    %4 = vector.load %arg3[%c0_3, %c0_4] : memref<8x128xbf16, #tpu.memory_space<vmem>>, vector<8x128xbf16>
    tpu.vector_store %arg3[%c0_3, %c0_4], %3 {strides = array<i32>} : memref<8x128xbf16, #tpu.memory_space<vmem>>, vector<8x128xbf16>,
    %5 = arith.extf %3 : vector<8x128xbf16> to vector<8x128xf32>
    %6 = vector.shape_cast %5 : vector<8x128xf32> to vector<1x8x128xf32>
    %cst_5 = arith.constant dense<0.000000e+00> : vector<8x128xf32>
    %7 = vector.multi_reduction <add>, %6, %cst_5 [0] : vector<1x8x128xf32> to vector<8x128xf32>
    %c0_6 = arith.constant 0 : index
    %c0_7 = arith.constant 0 : index
    %c0_8 = arith.constant 0 : index
    %8 = vector.load %arg4[%c0_6, %c0_7, %c0_8] : memref<1x8x128xf32, #tpu.memory_space<vmem>>, vector<1x8x128xf32>
    %9 = vector.shape_cast %8 : vector<1x8x128xf32> to vector<8x128xf32>
    %10 = vector.shape_cast %7 : vector<8x128xf32> to vector<1x8x128xf32>
    tpu.vector_store %arg4[%c0_6, %c0_7, %c0_8], %10 {strides = array<i32>} : memref<1x8x128xf32, #tpu.memory_space<vmem>>, vector<1x8x128xf32>,
    %11 = arith.mulf %6, %6 : vector<1x8x128xf32>
    %cst_9 = arith.constant dense<0.000000e+00> : vector<8x128xf32>
    %12 = vector.multi_reduction <add>, %11, %cst_9 [0] : vector<1x8x128xf32> to vector<8x128xf32>
    %c0_10 = arith.constant 0 : index
    %c0_11 = arith.constant 0 : index
    %c0_12 = arith.constant 0 : index
    %13 = vector.load %arg5[%c0_10, %c0_11, %c0_12] : memref<1x8x128xf32, #tpu.memory_space<vmem>>, vector<1x8x128xf32>
    %14 = vector.shape_cast %13 : vector<1x8x128xf32> to vector<8x128xf32>
    %15 = vector.shape_cast %12 : vector<8x128xf32> to vector<1x8x128xf32>
    tpu.vector_store %arg5[%c0_10, %c0_11, %c0_12], %15 {strides = array<i32>} : memref<1x8x128xf32, #tpu.memory_space<vmem>>, vector<1x8x128xf32>,
    return
  }
  func.func @transform_0(%arg0: i32) -> (i32, i32) {
    %c0_i32 = arith.constant 0 : i32
    %c0_i32_0 = arith.constant 0 : i32
    return %arg0, %c0_i32 : i32, i32
  }
  func.func @transform_1(%arg0: i32) -> (i32, i32) {
    %c0_i32 = arith.constant 0 : i32
    %c0_i32_0 = arith.constant 0 : i32
    %c0_i32_1 = arith.constant 0 : i32
    return %c0_i32, %c0_i32_0 : i32, i32
  }
  func.func @transform_2(%arg0: i32) -> (i32, i32) {
    %c0_i32 = arith.constant 0 : i32
    %c0_i32_0 = arith.constant 0 : i32
    return %arg0, %c0_i32 : i32, i32
  }
  func.func @transform_3(%arg0: i32) -> (i32, i32, i32) {
    %c0_i32 = arith.constant 0 : i32
    %c0_i32_0 = arith.constant 0 : i32
    %c0_i32_1 = arith.constant 0 : i32
    return %arg0, %c0_i32, %c0_i32_0 : i32, i32, i32
  }
  func.func @transform_4(%arg0: i32) -> (i32, i32, i32) {
    %c0_i32 = arith.constant 0 : i32
    %c0_i32_0 = arith.constant 0 : i32
    %c0_i32_1 = arith.constant 0 : i32
    return %arg0, %c0_i32, %c0_i32_0 : i32, i32, i32
  }
}

</mosaic_0001>

<bundles_post_ra>
// kernel: tpu_custom_call.1
= control target key start
LH: loop header
LB: loop body
LE: loop exit
PB: predicated region body
PF: predicated region fallthrough
CT: control target
= control target key end

     0   :  { %10 = vsyncpa [#allocation3], 0  ;;  %s410_s0 = inlined_call_operand.hbm [shape: bf16[8,128], index: 0, kind: input, shape index: {}]   ;;  %s411_s1 = inlined_call_operand.hbm [shape: bf16[128,128], index: 1, kind: input, shape index: {}]   ;;  %s412_s2 = inlined_call_operand.hbm [shape: bf16[8,128], index: 2, kind: output, shape index: {0}]   ;;  %s413_s3 = inlined_call_operand.hbm [shape: f32[1,8,128], index: 3, kind: output, shape index: {1}]   ;;  %s414_s4 = inlined_call_operand.hbm [shape: f32[1,8,128], index: 4, kind: output, shape index: {2}]  }
   0x1   :  { %11 = vsyncpa [#allocation6], 0 }
   0x2   :  { %12 = vsyncpa [#allocation4], 0 }
   0x3   :  { %13 = vsyncpa [#allocation9], 0  ;;  %s361_s15 = smov [#allocation2]   ;;  %s362_s17 = smov [#allocation5]  }
   0x4   :  { %s20_s16 = sshll.u32 %s361_s15, 4  ;;  %s29_s18 = sshll.u32 %s362_s17, 4  ;;  %s21_s16 = int_to_ptr.vmem [resolvable:$true] %s20_s16  ;;  %s30_s18 = int_to_ptr.vmem [resolvable:$true] %s29_s18 }
   0x5   :  { %s261_s19 = scalar_lea.vmem %s21_s16, 64  ;;  %p266_p1 = scmp.lt.s32.totalorder %s21_s16, %s21_s16 }
   0x6   :  { %p262_p0 = scmp.ne.s32.totalorder %s21_s16, %s261_s19  ;;  %p267_p2 = scmp.lt.s32.totalorder %s261_s19, %s261_s19 }
   0x8   :  { %p268_p3 = por %p267_p2, %p266_p1 }
   0xa   :  { %p269_p4 = pnand %p268_p3, %p262_p0 }
   0xc   :  { %272 = shalt.err (!%p269_p4)
}
   0xd   :  { %23 = dma.hbm_to_vmem [thread:$0]  %s410_s0, 64, %s21_s16, [#allocation3]  }
   0xe   :  { %s281_s22 = scalar_lea.vmem %s30_s18, 1024  ;;  %p286_p6 = scmp.lt.s32.totalorder %s30_s18, %s30_s18 }
   0xf   :  { %p282_p5 = scmp.ne.s32.totalorder %s30_s18, %s281_s22  ;;  %p287_p7 = scmp.lt.s32.totalorder %s281_s22, %s281_s22 }
  0x11   :  { %p288_p8 = por %p287_p7, %p286_p6 }
  0x13   :  { %p289_p9 = pnand %p288_p8, %p282_p5 }
  0x15   :  { %292 = shalt.err (!%p289_p9)
}
  0x16   :  { %s363_s23 = smov 64   ;;  %s364_s24 = smov 4  }
  0x17   :  { %35 = dma.hbm_to_vmem [thread:$0]  %s411_s1, 1024, %s30_s18, [#allocation6], %s363_s23, %s363_s23, %s364_s24  }
  0x18   :  { %353 = dma.done.wait [#allocation3], 64  }
  0x19   :  { %354 = vsyncadd [#allocation3], 4294967232 }
  0x1a   :  { %355 = dma.done.wait [#allocation6], 1024  }
  0x1b   :  { %356 = vsyncadd [#allocation6], 4294966272  ;;  %v365_v0 = vmov 0.0   ;;  %vm366_vm0 = vmmov 0   ;;  %v245_v1 = vld [vmem:[#allocation5 + $0x38] sm:$0xff]   ;;  %v246_v2 = vld [vmem:[#allocation5 + $0x30] sm:$0xff]  }
  0x1c   :  { %216 = vmatprep.subr.bf16.mxu0 %v365_v0  ;;  %232 = vmatprep.mubr.msk.bf16.mxu0 %vm366_vm0, %v365_v0  ;;  %v247_v3 = vld [vmem:[#allocation5 + $0x28] sm:$0xff]   ;;  %v248_v4 = vld [vmem:[#allocation5 + $0x20] sm:$0xff]   ;;  %v249_v5 = vld [vmem:[#allocation5 + $0x18] sm:$0xff]   ;;  %s367_s0 = smov [#allocation7]   ;;  %s368_s27 = smov [#allocation8]  }
  0x1d   :  { %217 = vmatpush3.bf16.msra.mxu0 %v245_v1  ;;  %v250_v6 = vld [vmem:[#allocation5 + $0x10] sm:$0xff]   ;;  %v251_v7 = vld [vmem:[#allocation5 + $0x8] sm:$0xff]   ;;  %v252_v8 = vld [vmem:[#allocation5] sm:$0xff]   ;;  %s162_s1 = sshll.u32 %s367_s0, 4  ;;  %s172_s28 = sshll.u32 %s368_s27, 4  ;;  %s163_s1 = int_to_ptr.vmem [resolvable:$true] %s162_s1  ;;  %s173_s28 = int_to_ptr.vmem [resolvable:$true] %s172_s28 }
  0x1e   :  { %218 = vmatprep.subr.bf16.mxu0 %v365_v0  ;;  %v43_v9 = vld [vmem:[#allocation2] sm:$0xf]  ;;  %s369_s29 = smov [#allocation10]   ;;  %s293_s5 = scalar_lea.vmem %s163_s1, 64 }
  0x1f   :  { %s182_s30 = sshll.u32 %s369_s29, 4  ;;  %p294_p10 = scmp.ne.s32.totalorder %s163_s1, %s293_s5  ;;  %s183_s30 = int_to_ptr.vmem [resolvable:$true] %s182_s30 }
  0x20   :  { %p298_p11 = scmp.lt.s32.totalorder %s163_s1, %s163_s1  ;;  %p299_p12 = scmp.lt.s32.totalorder %s293_s5, %s293_s5 }
  0x21   :  { %219 = vmatpush3.bf16.msra.mxu0 %v246_v2 }
  0x22   :  { %220 = vmatprep.subr.bf16.mxu0 %v365_v0  ;;  %p300_p13 = por %p299_p12, %p298_p11 }
  0x24   :  { %p301_p0 = pnand %p300_p13, %p294_p10 }
  0x25   :  { %221 = vmatpush3.bf16.msra.mxu0 %v247_v3 }
  0x26   :  { %222 = vmatprep.subr.bf16.mxu0 %v365_v0 }
  0x29   :  { %223 = vmatpush3.bf16.msra.mxu0 %v248_v4 }
  0x2a   :  { %224 = vmatprep.subr.bf16.mxu0 %v365_v0 }
  0x2d   :  { %225 = vmatpush3.bf16.msra.mxu0 %v249_v5 }
  0x2e   :  { %226 = vmatprep.subr.bf16.mxu0 %v365_v0 }
  0x31   :  { %227 = vmatpush3.bf16.msra.mxu0 %v250_v6 }
  0x32   :  { %228 = vmatprep.subr.bf16.mxu0 %v365_v0 }
  0x35   :  { %229 = vmatpush3.bf16.msra.mxu0 %v251_v7 }
  0x36   :  { %230 = vmatprep.subr.bf16.mxu0 %v365_v0 }
  0x39   :  { %231 = vmatpush3.bf16.msra.mxu0 %v252_v8 }
  0x3c   :  { %233 = vmatmul.mubr.bf16.vlgmr.msra.gmra.mxu0 %v43_v9 }
  0xfc   :  { %v142_v10 = vpop.f32.mrf.mxu0 }
  0xfd   :  { %v148_v11 = vpack.c.bf16 %v142_v10, %v142_v10 }
  0xfe   :  { %v234_v12 = vpop.f32.mrf.mxu0 }
  0xff   :  { %v150_v13 = vunpack.c.l.bf16 %v148_v11  ;;  %149 = vst [vmem:[#allocation7] sm:$0xf] %v148_v11 }
 0x100   :  { %v145_v14 = vpop.f32.mrf.mxu0 }
 0x101   :  { %304 = shalt.err (!%p301_p0)
}
 0x102   :  { %165 = dma.vmem_to_hbm [thread:$0]  %s163_s1, 64, %s412_s2, [#allocation4]   ;;  %v153_v15 = vmul.f32 %v150_v13, %v150_v13  ;;  %152 = vst [vmem:[#allocation8] sm:$0xff] %v150_v13  ;;  %v235_v16 = vpop.f32.mrf.mxu0 }
 0x103   :  { %s313_s8 = scalar_lea.vmem %s173_s28, 128  ;;  %p318_p2 = scmp.lt.s32.totalorder %s173_s28, %s173_s28 }
 0x104   :  { %p314_p1 = scmp.ne.s32.totalorder %s173_s28, %s313_s8  ;;  %p319_p3 = scmp.lt.s32.totalorder %s313_s8, %s313_s8 }
 0x106   :  { %p320_p4 = por %p319_p3, %p318_p2 }
 0x108   :  { %p321_p5 = pnand %p320_p4, %p314_p1 }
 0x10a   :  { %324 = shalt.err (!%p321_p5)
}
 0x10b   :  { %175 = dma.vmem_to_hbm [thread:$0]  %s173_s28, 128, %s413_s3, [#allocation9]   ;;  %155 = vst [vmem:[#allocation10] sm:$0xff] %v153_v15 }
 0x10c   :  { %s333_s11 = scalar_lea.vmem %s183_s30, 128  ;;  %p338_p7 = scmp.lt.s32.totalorder %s183_s30, %s183_s30 }
 0x10d   :  { %p334_p6 = scmp.ne.s32.totalorder %s183_s30, %s333_s11  ;;  %p339_p8 = scmp.lt.s32.totalorder %s333_s11, %s333_s11 }
 0x10f   :  { %p340_p9 = por %p339_p8, %p338_p7 }
 0x111   :  { %p341_p10 = pnand %p340_p9, %p334_p6 }
 0x113   :  { %344 = shalt.err (!%p341_p10)
}
 0x114   :  { %185 = dma.vmem_to_hbm [thread:$0]  %s183_s30, 128, %s414_s4, [#allocation9]  }
 0x115   :  { %357 = dma.done.wait [#allocation4], 64  }
 0x116   :  { %358 = vsyncadd [#allocation4], 4294967232 }
 0x117   :  { %359 = dma.done.wait [#allocation9], 256  }
 0x118   :  { %360 = vsyncadd [#allocation9], 4294967040 }
 0x119   :  { %195 = vsyncpa [#allocation3], 1 }
 0x11a   :  { %196 = vsyncpa [#allocation6], 1 }
 0x11b   :  { %197 = vsyncpa [#allocation4], 1 }
 0x11c   :  { %198 = vsyncpa [#allocation9], 1 }

</bundles_post_ra>
